<compile_context>
chip_gen: v5e
topology: v5e:2x2
jax: 0.10.0
libtpu: 0.0.40
codegen_flags: <defaults>
</compile_context>

<pallas_src>
import jax
import jax.numpy as jnp
from jax.experimental import pallas as pl
from jax.experimental.pallas import tpu as pltpu


def _addcoords_kernel(x_ref, coords_ref, ox_ref, oy_ref):
    # x_ref     : (1, C,   TS)  input channels, flat spatial tile
    # coords_ref: (2, TS)       row 0 = xx values, row 1 = yy values
    # ox_ref, oy_ref: (1, C+1, TS)
    c = x_ref.shape[1]
    x = x_ref[0]                                  # (C, TS)
    ox_ref[0, 0:c, :] = x
    oy_ref[0, 0:c, :] = x
    ox_ref[0, c:c + 1, :] = coords_ref[0:1, :]
    oy_ref[0, c:c + 1, :] = coords_ref[1:2, :]


def _vmem_budget_and_limit():
    """Generation-aware (budget for double-buffered tiles, scoped vmem limit)."""
    default_cap = 64 * 1024 * 1024
    try:
        cap = int(getattr(pltpu.get_tpu_info(), "vmem_capacity_bytes",
                          default_cap))
    except Exception:  # interpret mode / older runtimes
        cap = default_cap
    if cap <= 64 * 1024 * 1024:
        # v7x: 64 MiB physical per TC (32 MiB scoped default).
        return 24 * 1024 * 1024, 32 * 1024 * 1024
    # v5e / v6e: 128 MiB physical; raise the scoped limit explicitly so a
    # bigger-than-default tile never trips the 16/32 MiB scoped defaults.
    return 24 * 1024 * 1024, 48 * 1024 * 1024


def _pick_spatial_tile(hw, c, itemsize, budget):
    """Largest flat-spatial tile TS (multiple of 128, or the full extent)
    whose double-buffered VMEM footprint (input + 2 outputs + coords) fits
    `budget`. The grid uses cdiv, so TS need not divide H*W."""
    per_elem = (3 * c + 4) * itemsize * 2   # double-buffered bytes / spatial elem
    max_ts = max(budget // per_elem, 128)
    if hw <= max_ts:
        return hw                            # whole spatial extent in one block
    return (max_ts // 128) * 128


def addcoords(x):
    """x: (N, C, H, W) -> (out_x, out_y), each (N, C+1, H, W)."""
    N, C, H, W = x.shape
    HW = H * W
    dt = x.dtype
    itemsize = jnp.dtype(dt).itemsize

    # Coord rows in float32 (exact integer indices even for bf16 inputs),
    # same FP op order as PyTorch: (idx / (dim - 1)) * 2 - 1, then cast.
    # TODO(synk): H == 1 or W == 1 divides by zero, exactly like the module.
    row = (jnp.arange(H, dtype=jnp.float32) / (H - 1)) * 2.0 - 1.0   # f(i)
    col = (jnp.arange(W, dtype=jnp.float32) / (W - 1)) * 2.0 - 1.0   # f(j)
    xx = jnp.broadcast_to(row[:, None], (H, W)).reshape(HW)
    yy = jnp.broadcast_to(col[None, :], (H, W)).reshape(HW)
    coords = jnp.stack([xx, yy], axis=0).astype(dt)                  # (2, HW)

    x_flat = x.reshape(N, C, HW)

    budget, vmem_limit = _vmem_budget_and_limit()
    TS = _pick_spatial_tile(HW, C, itemsize, budget)
    num_s = pl.cdiv(HW, TS)
    # v7x megacore: make sure there are >= 2 grid steps when batch is 1.
    if N * num_s < 2 and HW > 128:
        TS = max(128, ((HW // 2) // 128) * 128)
        num_s = pl.cdiv(HW, TS)

    out_sds = jax.ShapeDtypeStruct((N, C + 1, HW), dt)

    # True HBM traffic: read x + coords once, write both outputs.
    bytes_accessed = (N * C * HW + 2 * HW + 2 * N * (C + 1) * HW) * itemsize

    grid_spec = pltpu.PrefetchScalarGridSpec(
        num_scalar_prefetch=0,
        # Batch is the innermost axis so the coords block index is constant
        # across it and its DMA is elided after the first inner step.
        grid=(num_s, N),
        in_specs=[
            pl.BlockSpec((1, C, TS), lambda s, n: (n, 0, s)),
            pl.BlockSpec((2, TS), lambda s, n: (0, s)),
        ],
        out_specs=[
            pl.BlockSpec((1, C + 1, TS), lambda s, n: (n, 0, s)),
            pl.BlockSpec((1, C + 1, TS), lambda s, n: (n, 0, s)),
        ],
    )

    out_x_flat, out_y_flat = pl.pallas_call(
        _addcoords_kernel,
        out_shape=(out_sds, out_sds),
        grid_spec=grid_spec,
        compiler_params=pltpu.CompilerParams(
            dimension_semantics=("parallel", "parallel"),
            vmem_limit_bytes=vmem_limit),
        cost_estimate=pl.CostEstimate(
            flops=0, transcendentals=0, bytes_accessed=int(bytes_accessed)),
    )(x_flat, coords)

    return (out_x_flat.reshape(N, C + 1, H, W),
            out_y_flat.reshape(N, C + 1, H, W))


def _reference(x):
    N, C, H, W = x.shape
    row = jnp.broadcast_to(jnp.arange(H, dtype=jnp.float32)[:, None], (H, W))
    col = jnp.broadcast_to(jnp.arange(W, dtype=jnp.float32)[None, :], (H, W))
    xx = (row / (H - 1)) * 2.0 - 1.0
    yy = (col / (W - 1)) * 2.0 - 1.0
    xx = jnp.broadcast_to(xx[None, None], (N, 1, H, W)).astype(x.dtype)
    yy = jnp.broadcast_to(yy[None, None], (N, 1, H, W)).astype(x.dtype)
    return (jnp.concatenate([x, xx], axis=1),
            jnp.concatenate([x, yy], axis=1))


if __name__ == "__main__":
    key = jax.random.PRNGKey(0)
    N, C, H, W = 2, 4, 16, 16
    x = jax.random.normal(key, (N, C, H, W), dtype=jnp.float32)

    out_x, out_y = addcoords(x)
    jax.block_until_ready((out_x, out_y))

    ref_x, ref_y = _reference(x)
    assert out_x.shape == (N, C + 1, H, W) and out_y.shape == (N, C + 1, H, W)
    assert jnp.allclose(out_x, ref_x, atol=1e-6), "out_x mismatch"
    assert jnp.allclose(out_y, ref_y, atol=1e-6), "out_y mismatch"

    print("KERNEL_OK")
</pallas_src>

<mosaic_0001>
module attributes {stable_mosaic.version = 11 : i64} {
  func.func @_addcoords_kernel(%arg0: i32, %arg1: i32, %arg2: memref<1x4x256xf32, #tpu.memory_space<vmem>>, %arg3: memref<2x256xf32, #tpu.memory_space<vmem>>, %arg4: memref<1x5x256xf32, #tpu.memory_space<vmem>>, %arg5: memref<1x5x256xf32, #tpu.memory_space<vmem>>) attributes {dimension_semantics = [#tpu.dimension_semantics<parallel>, #tpu.dimension_semantics<parallel>], iteration_bounds = array<i64: 1, 2>, scalar_prefetch = 0 : i64, scratch_operands = 0 : i64, tpu.core_type = #tpu.core_type<tc>, window_params = [{transform_indices = @transform_0, window_bounds = array<i64: 1, 4, 256>}, {transform_indices = @transform_1, window_bounds = array<i64: 2, 256>}, {transform_indices = @transform_2, window_bounds = array<i64: 1, 5, 256>}, {transform_indices = @transform_3, window_bounds = array<i64: 1, 5, 256>}]} {
    %c0 = arith.constant 0 : index
    %c0_0 = arith.constant 0 : index
    %c0_1 = arith.constant 0 : index
    %0 = vector.load %arg2[%c0, %c0_0, %c0_1] : memref<1x4x256xf32, #tpu.memory_space<vmem>>, vector<1x4x256xf32>
    %1 = vector.shape_cast %0 : vector<1x4x256xf32> to vector<4x256xf32>
    %c0_2 = arith.constant 0 : index
    %c0_3 = arith.constant 0 : index
    %c0_4 = arith.constant 0 : index
    %2 = vector.load %arg4[%c0_2, %c0_3, %c0_4] : memref<1x5x256xf32, #tpu.memory_space<vmem>>, vector<1x4x256xf32>
    %3 = vector.shape_cast %2 : vector<1x4x256xf32> to vector<4x256xf32>
    %4 = vector.shape_cast %1 : vector<4x256xf32> to vector<1x4x256xf32>
    tpu.vector_store %arg4[%c0_2, %c0_3, %c0_4], %4 {strides = array<i32>} : memref<1x5x256xf32, #tpu.memory_space<vmem>>, vector<1x4x256xf32>,
    %c0_5 = arith.constant 0 : index
    %c0_6 = arith.constant 0 : index
    %c0_7 = arith.constant 0 : index
    %5 = vector.load %arg5[%c0_5, %c0_6, %c0_7] : memref<1x5x256xf32, #tpu.memory_space<vmem>>, vector<1x4x256xf32>
    %6 = vector.shape_cast %5 : vector<1x4x256xf32> to vector<4x256xf32>
    %7 = vector.shape_cast %1 : vector<4x256xf32> to vector<1x4x256xf32>
    tpu.vector_store %arg5[%c0_5, %c0_6, %c0_7], %7 {strides = array<i32>} : memref<1x5x256xf32, #tpu.memory_space<vmem>>, vector<1x4x256xf32>,
    %c0_8 = arith.constant 0 : index
    %c0_9 = arith.constant 0 : index
    %8 = vector.load %arg3[%c0_8, %c0_9] : memref<2x256xf32, #tpu.memory_space<vmem>>, vector<1x256xf32>
    %c0_10 = arith.constant 0 : index
    %c4 = arith.constant 4 : index
    %c0_11 = arith.constant 0 : index
    %9 = vector.load %arg4[%c0_10, %c4, %c0_11] : memref<1x5x256xf32, #tpu.memory_space<vmem>>, vector<1x1x256xf32>
    %10 = vector.shape_cast %9 : vector<1x1x256xf32> to vector<1x256xf32>
    %11 = vector.shape_cast %8 : vector<1x256xf32> to vector<1x1x256xf32>
    tpu.vector_store %arg4[%c0_10, %c4, %c0_11], %11 {strides = array<i32>} : memref<1x5x256xf32, #tpu.memory_space<vmem>>, vector<1x1x256xf32>,
    %c1 = arith.constant 1 : index
    %c0_12 = arith.constant 0 : index
    %12 = vector.load %arg3[%c1, %c0_12] : memref<2x256xf32, #tpu.memory_space<vmem>>, vector<1x256xf32>
    %c0_13 = arith.constant 0 : index
    %c4_14 = arith.constant 4 : index
    %c0_15 = arith.constant 0 : index
    %13 = vector.load %arg5[%c0_13, %c4_14, %c0_15] : memref<1x5x256xf32, #tpu.memory_space<vmem>>, vector<1x1x256xf32>
    %14 = vector.shape_cast %13 : vector<1x1x256xf32> to vector<1x256xf32>
    %15 = vector.shape_cast %12 : vector<1x256xf32> to vector<1x1x256xf32>
    tpu.vector_store %arg5[%c0_13, %c4_14, %c0_15], %15 {strides = array<i32>} : memref<1x5x256xf32, #tpu.memory_space<vmem>>, vector<1x1x256xf32>,
    return
  }
  func.func @transform_0(%arg0: i32, %arg1: i32) -> (i32, i32, i32) {
    %c0_i32 = arith.constant 0 : i32
    %c0_i32_0 = arith.constant 0 : i32
    return %arg1, %c0_i32, %arg0 : i32, i32, i32
  }
  func.func @transform_1(%arg0: i32, %arg1: i32) -> (i32, i32) {
    %c0_i32 = arith.constant 0 : i32
    %c0_i32_0 = arith.constant 0 : i32
    return %c0_i32, %arg0 : i32, i32
  }
  func.func @transform_2(%arg0: i32, %arg1: i32) -> (i32, i32, i32) {
    %c0_i32 = arith.constant 0 : i32
    %c0_i32_0 = arith.constant 0 : i32
    return %arg1, %c0_i32, %arg0 : i32, i32, i32
  }
  func.func @transform_3(%arg0: i32, %arg1: i32) -> (i32, i32, i32) {
    %c0_i32 = arith.constant 0 : i32
    %c0_i32_0 = arith.constant 0 : i32
    return %arg1, %c0_i32, %arg0 : i32, i32, i32
  }
}

</mosaic_0001>

<bundles_post_ra>
// kernel: tpu_custom_call.1
= control target key start
LH: loop header
LB: loop body
LE: loop exit
PB: predicated region body
PF: predicated region fallthrough
CT: control target
= control target key end

     0   :  { %9 = vsyncpa [#allocation3], 0  ;;  %s792_s0 = inlined_call_operand.hbm [shape: f32[2,4,256], index: 0, kind: input, shape index: {}]   ;;  %s793_s1 = inlined_call_operand.hbm [shape: f32[2,256], index: 1, kind: input, shape index: {}]   ;;  %s794_s2 = inlined_call_operand.vmem [shape: f32[2,5,256], index: 2, kind: output, shape index: {0}]   ;;  %s795_s3 = inlined_call_operand.vmem [shape: f32[2,5,256], index: 3, kind: output, shape index: {1}]  }
   0x1   :  { %11 = vsyncpa [#allocation3 + $0x1], 0 }
   0x2   :  { %12 = vsyncpa [#allocation5], 0  ;;  %s678_s12 = smov 0   ;;  %s680_s13 = smov 0  }
   0x3   :  { %s682_s14 = smov 0   ;;  %s684_s15 = smov 0  }
   0x4   :  { %s686_s16 = smov 0   ;;  %s688_s17 = smov 0  }
   0x5 LB: > { %s453_s18 = sadd.s32 4294967295, %s655_s17   ;;  %p52_p0 = scmp.ne.s32.totalorder %s639_s13, %s635_s12  ;;  %s655_s17 = sphi %s688_s17, %s18_s17   ;;  %s651_s16 = sphi %s686_s16, %s804_s16   ;;  %s647_s15 = sphi %s684_s15, %s803_s15   ;;  %s643_s14 = sphi %s682_s14, %s802_s14   ;;  %s639_s13 = sphi %s680_s13, %s801_s13   ;;  %s635_s12 = sphi %s678_s12, %s800_s12  }
   0x6   : > { %p708_p1 = scmp.eq.s32.totalorder %s453_s18, 0  ;;  %p455_p2 = scmp.ge.s32.totalorder %s655_s17, 1 }
   0x7   : > { %p145_p3 = scmp.lt.s32.totalorder %s655_s17, 3  ;;  %s160_s23 = sshll.u32 %s793_s1, 4  ;;  %s161_s23 = int_to_ptr.hbm [resolvable:$true] %s160_s23 }
   0x8   : > { %p716_p4 = por %p708_p1, %p52_p0  ;;  %s657_s25 = smov [#allocation4]  }
   0x9   : > { %p723_p5 = pnand %p455_p2, %p145_p3  ;;  %s162_s26 = sshll.u32 %s657_s25, 4  ;;  %s163_s26 = int_to_ptr.vmem [resolvable:$true] %s162_s26 }
   0xa   : > { %s27_s27 = sadd.s32 1, %s651_s16  ;;  %p46_p9 = scmp.ne.s32.totalorder %s643_s14, %s639_s13 }
   0xb   : > { %p481_p6 = pneg %p723_p5  ;;  %p28_p8 = scmp.ge.s32.totalorder %s27_s27, 2 }
   0xc   : > { %p47_p10 = scmp.eq.s32.totalorder %s655_s17, 0  ;;  %s39_s28 = sadd.s32 1, %s643_s14 }
   0xd   : > { %p482_p7 = pnand %p481_p6, %p708_p1  ;;  %s806_s27 = smov (%p28_p8, %s27_s27), 0 }
   0xe   : > { %p738_p11 = por %p47_p10, %p46_p9  ;;  %s34_s30 = ssub.s32 %s651_s16, %s806_s27 }
   0xf   : > { %484 = dma.hbm_to_vmem [thread:$0]  (!%p482_p7), %s161_s23, 64, %s163_s26, [#allocation5]  }
  0x10   : > { %s173_s4 = sand.u32 1, %s643_s14   ;;  %p37_p12 = scmp.eq.s32.totalorder %s34_s30, 0 }
  0x11   : > { %p490_p13 = scmp.lt.s32.totalorder %s655_s17, 2  ;;  %s458_s5 = sshll.u32 %s173_s4, 3 }
  0x12   : > { %s472_s6 = sshll.u32 %s651_s16, 3  ;;  %s177_s12 = scalar_lea.vmem [#allocation2], %s458_s5 }
  0x13   : > { %s748_s7 = scalar_select %p37_p12, %s643_s14, %s39_s28  }
  0x14   : > { %s184_s10 = scalar_lea.hbm %s792_s0, %s472_s6  ;;  %s188_s18 = sshll.u32 %s177_s12, 4  ;;  %s189_s18 = int_to_ptr.vmem [resolvable:$true] %s188_s18 }
  0x15   : > { %s186_s11 = sshll.u32 %s184_s10, 4  ;;  %p486_p0 = pnand %p490_p13, %p738_p11  ;;  %s187_s11 = int_to_ptr.hbm [resolvable:$true] %s186_s11 }
  0x16   : > { %s174_s21 = scalar_lea.sflag [#allocation3], %s173_s4  ;;  %197 = sbr.rel (%p723_p5) target bundleno = 51 (0x33), region = 28 }
  0x17   : > { %488 = dma.hbm_to_vmem [thread:$0]  (!%p486_p0), %s187_s11, 128, %s189_s18, %s174_s21  }
  0x18   : > { %s199_s22 = sand.u32 (!%p723_p5), 1, %s639_s13  }
  0x19   : > { %s462_s23 = sshll.u32 (!%p723_p5), %s199_s22, 3  ;;  %s200_s25 = scalar_lea.sflag (!%p723_p5), [#allocation3], %s199_s22 }
  0x1a   : > { %s203_s26 = scalar_lea.vmem (!%p723_p5), [#allocation2], %s462_s23 }
  0x1b   : > { %626 = dma.done.wait (%p716_p4), %s200_s25, 128  }
  0x1c   : > { %628 = vsyncadd (%p716_p4), %s200_s25, 4294967168 }
  0x1d   : > { %630 = dma.done.wait (%p708_p1), [#allocation5], 64  }
  0x1e   : > { %632 = vsyncadd (%p708_p1), [#allocation5], 4294967232  ;;  %p248_p2 = scmp.lt.s32.totalorder %s647_s15, 1  ;;  %v284_v0 = vlaneseq  ;;  %v267_v1 = vld [vmem:[%s203_s26] sm:$0xff] }
  0x1f   : > { %v283_v2 = vld [vmem:[#allocation4] ss:$2 sm:$0x3]  ;;  %269 = vst [vmem:[#allocation1] ss:$2 sm:$0xff] %v267_v1 }
  0x20   : > { %s808_s15 = smov (!%p248_p2, %s647_s15), 1  ;;  %vm286_vm0 = vcmp.lt.s32.totalorder %v284_v0, 256  ;;  %v292_v3 = vld [vmem:[#allocation4 + $0x1] ss:$2 sm:$0x3] }
  0x21   : > { %s473_s24 = sshll.u32 %s808_s15, 4 }
  0x22   : > { %s265_s30 = scalar_lea.vmem %s795_s3, %s473_s24  ;;  %s255_s5 = scalar_lea.vmem %s794_s2, %s473_s24 }
  0x23   : > { %468 = vst.msk [vmem:[%s255_s5 + $0x4] ss:$8 sm:$0x3] %vm286_vm0, %v283_v2 }
  0x24   : > { %469 = vst.msk [vmem:[%s265_s30 + $0x4] ss:$8 sm:$0x3] %vm286_vm0, %v292_v3 }
  0x26   : > { %v270_v4 = vld.sshfl [vmem:[#allocation1] sm:$0xff pattern:$0x75316420]  ;;  %v271_v5 = vld.sshfl [vmem:[#allocation1 + $0x8] sm:$0xff pattern:$0x75316420] }
  0x27   : > { %274 = vst [vmem:[%s255_s5] sm:$0xf] %v270_v4 }
  0x28   : > { %275 = vst [vmem:[%s255_s5 + $0x8] sm:$0xf] %v271_v5 }
  0x29   : > { %276 = vst [vmem:[#allocation1] ss:$2 sm:$0xff] %v267_v1 }
  0x30   : > { %v277_v6 = vld.sshfl [vmem:[#allocation1] sm:$0xff pattern:$0x75316420]  ;;  %v278_v7 = vld.sshfl [vmem:[#allocation1 + $0x8] sm:$0xff pattern:$0x75316420] }
  0x31   : > { %281 = vst [vmem:[%s265_s30] sm:$0xf] %v277_v6 }
  0x32   : > { %282 = vst [vmem:[%s265_s30 + $0x8] sm:$0xf] %v278_v7 }
  0x33 PF: > { %s18_s17 = sadd.s32 1, %s655_s17   ;;  %s800_s12 = smov %s639_s13 }
  0x34   : > { %p15_p1 = scmp.ge.s32.totalorder %s18_s17, 4   ;;  %s801_s13 = smov %s643_s14 }
  0x35   : > { %s802_s14 = smov %s748_s7  ;;  %s803_s15 = smov %s651_s16 }
  0x36   : > { %s804_s16 = smov %s806_s27  ;;  %17 = sbr.rel (!%p15_p1) target bundleno = 5 (0x5), region = 88 }
  0x3b   :  { %351 = vsyncpa [#allocation3], 1 }
  0x3c   :  { %353 = vsyncpa [#allocation3 + $0x1], 1 }
  0x3d   :  { %354 = vsyncpa [#allocation5], 1 }

</bundles_post_ra>
